<compile_context>
chip_gen: v7x
topology: tpu7x:2x2x1
jax: 0.10.0
libtpu: 0.0.40
codegen_flags: <defaults>
</compile_context>

<pallas_src>
import math
from functools import partial

import jax
import jax.numpy as jnp
from jax.experimental import pallas as pl
from jax.experimental.pallas import tpu as pltpu

RESOLUTION = 1024          # FastTrigLookup / FastPhaseProcessor resolution
GELU_C1 = 0.044715
GELU_C2 = math.sqrt(2.0 / math.pi)
TWO_PI = 2.0 * math.pi


def _round_up(n, m):
    return ((n + m - 1) // m) * m


def _phase_space_kernel(x_ref, wt_ref, b_ref, excr_ref, exci_ref, out_ref,
                        *, dim, pad_value):
    x = x_ref[...]                                            # (TM, D) f32

    # --- SimpleQuantumState -------------------------------------------------
    # fused_transform: Linear(D, 2D).  MXU matmul in wt_ref.dtype (bf16 or f32),
    # f32 accumulation; bias add and everything downstream in f32.
    t = jnp.dot(x.astype(wt_ref.dtype), wt_ref[...],
                preferred_element_type=jnp.float32)
    t = t + b_ref[...]                                        # (TM, 2D) f32

    # fused (tanh) GELU
    g = t * 0.5 * (1.0 + jnp.tanh(GELU_C2 * (t + GELU_C1 * t * t * t)))

    # LayerNorm over last dim (2D), eps=1e-5, weight=1, bias=0
    mu = jnp.mean(g, axis=-1, keepdims=True)
    var = jnp.mean((g - mu) * (g - mu), axis=-1, keepdims=True)
    n = (g - mu) * jax.lax.rsqrt(var + 1e-5)

    real_part = n[:, :dim]
    imag_part = n[:, dim:]

    # fast_phase_transform: quantized-angle sin/cos lookup ((res-1) scale,
    # trunc-toward-zero, negative indices wrap like PyTorch advanced indexing).
    phase_angles = jnp.arctan2(imag_part + 1e-8, real_part + 1e-8)
    idx = (phase_angles * ((RESOLUTION - 1) / TWO_PI)).astype(jnp.int32)
    idx = jnp.where(idx < 0, idx + RESOLUTION, idx)
    tbl_angle = idx.astype(jnp.float32) * (TWO_PI / (RESOLUTION - 1))
    sin_ph = jnp.sin(tbl_angle)
    cos_ph = jnp.cos(tbl_angle)

    real = real_part * cos_ph
    imag = imag_part * sin_ph
    scale_factor = math.sqrt(1.0 / dim)
    nrm = jax.lax.rsqrt(real * real + imag * imag + 1e-8) * scale_factor
    real = real * nrm
    imag = imag * nrm

    # --- EnhancedDynamicPhaseSpace ------------------------------------------
    # collapse test without the sqrt (exactly equivalent, saves one EUP op/elem):
    #   sqrt(r^2 + i^2 + 1e-8) < 0.1   <=>   r^2 + i^2 < 0.01 - 1e-8
    sq = real * real + imag * imag
    is_collapsing = (sq < (0.01 - 1e-8)).astype(jnp.float32)

    # excitation vectors are pre-scaled by excitation_factor in the wrapper
    real = real + is_collapsing * excr_ref[...]
    imag = imag + is_collapsing * exci_ref[...]

    nrm2 = jax.lax.rsqrt(real * real + imag * imag + 1e-8)
    real = real * nrm2
    imag = imag * nrm2

    # pad masking (elementwise where x == pad_token_id)
    # TODO(synk): the PyTorch code does (x == pad).unsqueeze(-1) which only
    # broadcast-matches when seq == dim; we implement the sane elementwise mask.
    pad_mask = x == pad_value
    real = jnp.where(pad_mask, 0.0, real)
    imag = jnp.where(pad_mask, 0.0, imag)

    # single fused lane-dense output slab: [ real | imag ] -> one writeback DMA
    out_ref[:, :dim] = real
    out_ref[:, dim:] = imag


@partial(jax.jit,
         static_argnames=("pad_token_id", "tile_rows", "matmul_in_bf16"))
def enhanced_dynamic_phase_space(x, w_t, b, excitation_factor, pad_token_id,
                                 *, tile_rows=256, matmul_in_bf16=True):
    """x: (B, S, D) f32; w_t: (D, 2D) = Linear.weight.T (pre-transposed once);
    b: (2D,) Linear bias.  Returns (real, imag), each (B, S, D) f32."""
    B, S, D = x.shape
    M = B * S

    # Row tile: as large as requested (multiple of 8), padded grid if needed.
    tm = min(_round_up(tile_rows, 8), _round_up(M, 8))
    M_pad = _round_up(M, tm)

    x2 = x.reshape(M, D)
    if M_pad != M:
        x2 = jnp.pad(x2, ((0, M_pad - M), (0, 0)))

    mm_dtype = jnp.bfloat16 if matmul_in_bf16 else jnp.float32
    wt = w_t.astype(mm_dtype)                      # (D, 2D)
    b2 = b.reshape(1, 2 * D).astype(jnp.float32)

    # excitation vectors from FastTrigLookup (resolution-scale indexing, as in
    # the PyTorch FastTrigLookup.sin/cos), pre-scaled by excitation_factor.
    energy_levels = jnp.linspace(0.0, 1.0, D, dtype=jnp.float32)
    a = energy_levels * TWO_PI
    idx = (jnp.mod(a, TWO_PI) / TWO_PI * RESOLUTION).astype(jnp.int32)
    tbl_angle = idx.astype(jnp.float32) * (TWO_PI / (RESOLUTION - 1))
    exc_real = (jnp.cos(tbl_angle) * excitation_factor).reshape(1, D)
    exc_imag = (jnp.sin(tbl_angle) * excitation_factor).reshape(1, D)

    kernel = partial(_phase_space_kernel, dim=D, pad_value=float(pad_token_id))

    # NOTE: weight/bias/excitation blocks are grid-invariant (index_map -> (0,0))
    # so they are only DMA'd once; for very large D on v7x consider bf16 +
    # K-tiling of the weight to stay inside the 64 MiB VMEM.
    out = pl.pallas_call(
        kernel,
        out_shape=jax.ShapeDtypeStruct((M_pad, 2 * D), jnp.float32),
        grid=(M_pad // tm,),
        in_specs=[
            pl.BlockSpec((tm, D), lambda i: (i, 0)),           # x rows
            pl.BlockSpec((D, 2 * D), lambda i: (0, 0)),        # weight^T
            pl.BlockSpec((1, 2 * D), lambda i: (0, 0)),        # bias
            pl.BlockSpec((1, D), lambda i: (0, 0)),            # excitation real
            pl.BlockSpec((1, D), lambda i: (0, 0)),            # excitation imag
        ],
        out_specs=pl.BlockSpec((tm, 2 * D), lambda i: (i, 0)), # [real | imag]
        compiler_params=pltpu.CompilerParams(
            dimension_semantics=("parallel",),
            vmem_limit_bytes=48 * 1024 * 1024),
    )(x2, wt, b2, exc_real, exc_imag)

    real = out[:M, :D].reshape(B, S, D)
    imag = out[:M, D:].reshape(B, S, D)
    return real, imag


if __name__ == "__main__":
    B, S, D = 2, 8, 32
    pad_token_id = 0

    key = jax.random.PRNGKey(0)
    kx, kw, kb = jax.random.split(key, 3)

    # deterministic parameter init (matches shapes/init schemes of the module)
    xavier_bound = math.sqrt(6.0 / (D + 2 * D))
    w = jax.random.uniform(kw, (2 * D, D), jnp.float32,
                           minval=-xavier_bound, maxval=xavier_bound)
    w_t = w.T                                  # transpose ONCE, outside the call
    bias_bound = 1.0 / math.sqrt(D)
    b = jax.random.uniform(kb, (2 * D,), jnp.float32,
                           minval=-bias_bound, maxval=bias_bound)
    excitation_factor = 0.1   # nn.Parameter(torch.ones(1) * 0.1)

    x = jax.random.normal(kx, (B, S, D), jnp.float32)
    # put some exact pad values in to exercise the mask
    x = x.at[0, 0, :].set(float(pad_token_id))

    real, imag = enhanced_dynamic_phase_space(x, w_t, b, excitation_factor,
                                              pad_token_id)
    jax.block_until_ready((real, imag))
    assert real.shape == (B, S, D) and imag.shape == (B, S, D)
    assert bool(jnp.all(jnp.isfinite(real))) and bool(jnp.all(jnp.isfinite(imag)))
    print("KERNEL_OK")
</pallas_src>

<mosaic_0001>
module attributes {stable_mosaic.version = 11 : i64} {
  func.func @_phase_space_kernel(%arg0: i32, %arg1: memref<16x32xf32, #tpu.memory_space<vmem>>, %arg2: memref<32x64xbf16, #tpu.memory_space<vmem>>, %arg3: memref<1x64xf32, #tpu.memory_space<vmem>>, %arg4: memref<1x32xf32, #tpu.memory_space<vmem>>, %arg5: memref<1x32xf32, #tpu.memory_space<vmem>>, %arg6: memref<16x64xf32, #tpu.memory_space<vmem>>) attributes {dimension_semantics = [#tpu.dimension_semantics<parallel>], iteration_bounds = array<i64: 1>, scalar_prefetch = 0 : i64, scratch_operands = 0 : i64, tpu.core_type = #tpu.core_type<tc>, window_params = [{transform_indices = @transform_0, window_bounds = array<i64: 16, 32>}, {pipeline_mode = #tpu.pipeline_mode<synchronous>, transform_indices = @transform_1, window_bounds = array<i64: 32, 64>}, {pipeline_mode = #tpu.pipeline_mode<synchronous>, transform_indices = @transform_2, window_bounds = array<i64: 1, 64>}, {pipeline_mode = #tpu.pipeline_mode<synchronous>, transform_indices = @transform_3, window_bounds = array<i64: 1, 32>}, {pipeline_mode = #tpu.pipeline_mode<synchronous>, transform_indices = @transform_4, window_bounds = array<i64: 1, 32>}, {transform_indices = @transform_5, window_bounds = array<i64: 16, 64>}]} {
    %c0 = arith.constant 0 : index
    %c0_0 = arith.constant 0 : index
    %0 = vector.load %arg1[%c0, %c0_0] : memref<16x32xf32, #tpu.memory_space<vmem>>, vector<16x32xf32>
    %1 = arith.truncf %0 : vector<16x32xf32> to vector<16x32xbf16>
    %c0_1 = arith.constant 0 : index
    %c0_2 = arith.constant 0 : index
    %2 = vector.load %arg2[%c0_1, %c0_2] : memref<32x64xbf16, #tpu.memory_space<vmem>>, vector<32x64xbf16>
    %cst = arith.constant dense<0.000000e+00> : vector<16x64xf32>
    %3 = tpu.matmul %1, %2, %cst {dimension_numbers = #tpu.dot_dimension_numbers<[1], [0], [0], [1], [0, 0, 1, 1], [], []>} : vector<16x32xbf16>, vector<32x64xbf16>, vector<16x64xf32> -> vector<16x64xf32>
    %c0_3 = arith.constant 0 : index
    %c0_4 = arith.constant 0 : index
    %4 = vector.load %arg3[%c0_3, %c0_4] : memref<1x64xf32, #tpu.memory_space<vmem>>, vector<1x64xf32>
    %5 = vector.broadcast %4 : vector<1x64xf32> to vector<16x64xf32>
    %6 = arith.addf %3, %5 : vector<16x64xf32>
    %cst_5 = arith.constant 5.000000e-01 : f32
    %7 = vector.broadcast %cst_5 : f32 to vector<16x64xf32>
    %8 = arith.mulf %6, %7 : vector<16x64xf32>
    %cst_6 = arith.constant 4.471500e-02 : f32
    %9 = vector.broadcast %cst_6 : f32 to vector<16x64xf32>
    %10 = arith.mulf %9, %6 : vector<16x64xf32>
    %11 = arith.mulf %10, %6 : vector<16x64xf32>
    %12 = arith.mulf %11, %6 : vector<16x64xf32>
    %13 = arith.addf %6, %12 : vector<16x64xf32>
    %cst_7 = arith.constant 0.797884583 : f32
    %14 = vector.broadcast %cst_7 : f32 to vector<16x64xf32>
    %15 = arith.mulf %14, %13 : vector<16x64xf32>
    %16 = math.tanh %15 : vector<16x64xf32>
    %cst_8 = arith.constant 1.000000e+00 : f32
    %17 = vector.broadcast %cst_8 : f32 to vector<16x64xf32>
    %18 = arith.addf %17, %16 : vector<16x64xf32>
    %19 = arith.mulf %8, %18 : vector<16x64xf32>
    %cst_9 = arith.constant dense<0.000000e+00> : vector<16xf32>
    %20 = vector.multi_reduction <add>, %19, %cst_9 [1] : vector<16x64xf32> to vector<16xf32>
    %21 = vector.shape_cast %20 : vector<16xf32> to vector<16x1xf32>
    %cst_10 = arith.constant 6.400000e+01 : f32
    %22 = vector.broadcast %cst_10 : f32 to vector<16x1xf32>
    %23 = arith.divf %21, %22 : vector<16x1xf32>
    %24 = vector.broadcast %23 : vector<16x1xf32> to vector<16x64xf32>
    %25 = arith.subf %19, %24 : vector<16x64xf32>
    %26 = vector.broadcast %23 : vector<16x1xf32> to vector<16x64xf32>
    %27 = arith.subf %19, %26 : vector<16x64xf32>
    %28 = arith.mulf %25, %27 : vector<16x64xf32>
    %cst_11 = arith.constant dense<0.000000e+00> : vector<16xf32>
    %29 = vector.multi_reduction <add>, %28, %cst_11 [1] : vector<16x64xf32> to vector<16xf32>
    %30 = vector.shape_cast %29 : vector<16xf32> to vector<16x1xf32>
    %cst_12 = arith.constant 6.400000e+01 : f32
    %31 = vector.broadcast %cst_12 : f32 to vector<16x1xf32>
    %32 = arith.divf %30, %31 : vector<16x1xf32>
    %33 = vector.broadcast %23 : vector<16x1xf32> to vector<16x64xf32>
    %34 = arith.subf %19, %33 : vector<16x64xf32>
    %cst_13 = arith.constant 9.99999974E-6 : f32
    %35 = vector.broadcast %cst_13 : f32 to vector<16x1xf32>
    %36 = arith.addf %32, %35 : vector<16x1xf32>
    %37 = math.rsqrt %36 : vector<16x1xf32>
    %38 = vector.broadcast %37 : vector<16x1xf32> to vector<16x64xf32>
    %39 = arith.mulf %34, %38 : vector<16x64xf32>
    %40 = vector.extract_strided_slice %39 {offsets = [0, 0], sizes = [16, 32], strides = [1, 1]} : vector<16x64xf32> to vector<16x32xf32>
    %41 = vector.extract_strided_slice %39 {offsets = [0, 32], sizes = [16, 32], strides = [1, 1]} : vector<16x64xf32> to vector<16x32xf32>
    %cst_14 = arith.constant 9.99999993E-9 : f32
    %42 = vector.broadcast %cst_14 : f32 to vector<16x32xf32>
    %43 = arith.addf %41, %42 : vector<16x32xf32>
    %cst_15 = arith.constant 9.99999993E-9 : f32
    %44 = vector.broadcast %cst_15 : f32 to vector<16x32xf32>
    %45 = arith.addf %40, %44 : vector<16x32xf32>
    %46 = math.atan2 %43, %45 : vector<16x32xf32>
    %cst_16 = arith.constant 162.815506 : f32
    %47 = vector.broadcast %cst_16 : f32 to vector<16x32xf32>
    %48 = arith.mulf %46, %47 : vector<16x32xf32>
    %49 = arith.fptosi %48 : vector<16x32xf32> to vector<16x32xi32>
    %c0_i32 = arith.constant 0 : i32
    %50 = vector.broadcast %c0_i32 : i32 to vector<16x32xi32>
    %51 = arith.cmpi slt, %49, %50 : vector<16x32xi32>
    %c1024_i32 = arith.constant 1024 : i32
    %52 = vector.broadcast %c1024_i32 : i32 to vector<16x32xi32>
    %53 = arith.addi %49, %52 : vector<16x32xi32>
    %54 = arith.select %51, %53, %49 : vector<16x32xi1>, vector<16x32xi32>
    %55 = arith.sitofp %54 : vector<16x32xi32> to vector<16x32xf32>
    %cst_17 = arith.constant 0.00614192104 : f32
    %56 = vector.broadcast %cst_17 : f32 to vector<16x32xf32>
    %57 = arith.mulf %55, %56 : vector<16x32xf32>
    %58 = math.sin %57 : vector<16x32xf32>
    %59 = math.cos %57 : vector<16x32xf32>
    %60 = arith.mulf %40, %59 : vector<16x32xf32>
    %61 = arith.mulf %41, %58 : vector<16x32xf32>
    %62 = arith.mulf %60, %60 : vector<16x32xf32>
    %63 = arith.mulf %61, %61 : vector<16x32xf32>
    %64 = arith.addf %62, %63 : vector<16x32xf32>
    %cst_18 = arith.constant 9.99999993E-9 : f32
    %65 = vector.broadcast %cst_18 : f32 to vector<16x32xf32>
    %66 = arith.addf %64, %65 : vector<16x32xf32>
    %67 = math.rsqrt %66 : vector<16x32xf32>
    %cst_19 = arith.constant 0.176776692 : f32
    %68 = vector.broadcast %cst_19 : f32 to vector<16x32xf32>
    %69 = arith.mulf %67, %68 : vector<16x32xf32>
    %70 = arith.mulf %60, %69 : vector<16x32xf32>
    %71 = arith.mulf %61, %69 : vector<16x32xf32>
    %72 = arith.mulf %70, %70 : vector<16x32xf32>
    %73 = arith.mulf %71, %71 : vector<16x32xf32>
    %74 = arith.addf %72, %73 : vector<16x32xf32>
    %cst_20 = arith.constant 9.999990e-03 : f32
    %75 = vector.broadcast %cst_20 : f32 to vector<16x32xf32>
    %76 = arith.cmpf olt, %74, %75 : vector<16x32xf32>
    %77 = arith.extui %76 : vector<16x32xi1> to vector<16x32xi32>
    %78 = arith.sitofp %77 : vector<16x32xi32> to vector<16x32xf32>
    %c0_21 = arith.constant 0 : index
    %c0_22 = arith.constant 0 : index
    %79 = vector.load %arg4[%c0_21, %c0_22] : memref<1x32xf32, #tpu.memory_space<vmem>>, vector<1x32xf32>
    %80 = vector.broadcast %79 : vector<1x32xf32> to vector<16x32xf32>
    %81 = arith.mulf %78, %80 : vector<16x32xf32>
    %82 = arith.addf %70, %81 : vector<16x32xf32>
    %c0_23 = arith.constant 0 : index
    %c0_24 = arith.constant 0 : index
    %83 = vector.load %arg5[%c0_23, %c0_24] : memref<1x32xf32, #tpu.memory_space<vmem>>, vector<1x32xf32>
    %84 = vector.broadcast %83 : vector<1x32xf32> to vector<16x32xf32>
    %85 = arith.mulf %78, %84 : vector<16x32xf32>
    %86 = arith.addf %71, %85 : vector<16x32xf32>
    %87 = arith.mulf %82, %82 : vector<16x32xf32>
    %88 = arith.mulf %86, %86 : vector<16x32xf32>
    %89 = arith.addf %87, %88 : vector<16x32xf32>
    %cst_25 = arith.constant 9.99999993E-9 : f32
    %90 = vector.broadcast %cst_25 : f32 to vector<16x32xf32>
    %91 = arith.addf %89, %90 : vector<16x32xf32>
    %92 = math.rsqrt %91 : vector<16x32xf32>
    %93 = arith.mulf %82, %92 : vector<16x32xf32>
    %94 = arith.mulf %86, %92 : vector<16x32xf32>
    %cst_26 = arith.constant 0.000000e+00 : f32
    %95 = vector.broadcast %cst_26 : f32 to vector<16x32xf32>
    %96 = arith.cmpf oeq, %0, %95 : vector<16x32xf32>
    %cst_27 = arith.constant 0.000000e+00 : f32
    %97 = vector.broadcast %cst_27 : f32 to vector<16x32xf32>
    %98 = arith.select %96, %97, %93 : vector<16x32xi1>, vector<16x32xf32>
    %cst_28 = arith.constant 0.000000e+00 : f32
    %99 = vector.broadcast %cst_28 : f32 to vector<16x32xf32>
    %100 = arith.select %96, %99, %94 : vector<16x32xi1>, vector<16x32xf32>
    %c0_29 = arith.constant 0 : index
    %c0_30 = arith.constant 0 : index
    %101 = vector.load %arg6[%c0_29, %c0_30] : memref<16x64xf32, #tpu.memory_space<vmem>>, vector<16x32xf32>
    tpu.vector_store %arg6[%c0_29, %c0_30], %98 {strides = array<i32>} : memref<16x64xf32, #tpu.memory_space<vmem>>, vector<16x32xf32>,
    %c0_31 = arith.constant 0 : index
    %c32 = arith.constant 32 : index
    %102 = vector.load %arg6[%c0_31, %c32] : memref<16x64xf32, #tpu.memory_space<vmem>>, vector<16x32xf32>
    tpu.vector_store %arg6[%c0_31, %c32], %100 {strides = array<i32>} : memref<16x64xf32, #tpu.memory_space<vmem>>, vector<16x32xf32>,
    return
  }
  func.func @transform_0(%arg0: i32) -> (i32, i32) {
    %c0_i32 = arith.constant 0 : i32
    %c0_i32_0 = arith.constant 0 : i32
    return %arg0, %c0_i32 : i32, i32
  }
  func.func @transform_1(%arg0: i32) -> (i32, i32) {
    %c0_i32 = arith.constant 0 : i32
    %c0_i32_0 = arith.constant 0 : i32
    %c0_i32_1 = arith.constant 0 : i32
    return %c0_i32, %c0_i32_0 : i32, i32
  }
  func.func @transform_2(%arg0: i32) -> (i32, i32) {
    %c0_i32 = arith.constant 0 : i32
    %c0_i32_0 = arith.constant 0 : i32
    %c0_i32_1 = arith.constant 0 : i32
    return %c0_i32, %c0_i32_0 : i32, i32
  }
  func.func @transform_3(%arg0: i32) -> (i32, i32) {
    %c0_i32 = arith.constant 0 : i32
    %c0_i32_0 = arith.constant 0 : i32
    %c0_i32_1 = arith.constant 0 : i32
    return %c0_i32, %c0_i32_0 : i32, i32
  }
  func.func @transform_4(%arg0: i32) -> (i32, i32) {
    %c0_i32 = arith.constant 0 : i32
    %c0_i32_0 = arith.constant 0 : i32
    %c0_i32_1 = arith.constant 0 : i32
    return %c0_i32, %c0_i32_0 : i32, i32
  }
  func.func @transform_5(%arg0: i32) -> (i32, i32) {
    %c0_i32 = arith.constant 0 : i32
    %c0_i32_0 = arith.constant 0 : i32
    return %arg0, %c0_i32 : i32, i32
  }
}

</mosaic_0001>

<bundles_post_ra>
// kernel: enhanced_dynamic_phase_space.1
= control target key start
LH: loop header
LB: loop body
LE: loop exit
PB: predicated region body
PF: predicated region fallthrough
CT: control target
= control target key end

     0   :  { %v913_v0 = vmov 0.0   ;;  %vm914_vm0 = vmmov 0   ;;  %vm47_vm1 = vcmask 261120   ;;  %vm110_vm2 = vcmask 523264   ;;  %s1157_s1 = inlined_call_operand.vmem [shape: bf16[32,64], index: 1, kind: input, shape index: {}]   ;;  %s1158_s0 = inlined_call_operand.vmem [shape: f32[16,32], index: 0, kind: input, shape index: {}]   ;;  %s1159_s2 = inlined_call_operand.vmem [shape: f32[1,64], index: 2, kind: input, shape index: {}]   ;;  %s1160_s4 = inlined_call_operand.vmem [shape: f32[1,32], index: 4, kind: input, shape index: {}]   ;;  %s1161_s3 = inlined_call_operand.vmem [shape: f32[1,32], index: 3, kind: input, shape index: {}]   ;;  %s1162_s5 = inlined_call_operand.vmem [shape: f32[16,64], index: 5, kind: output, shape index: {}]  }
   0x1   :  { %852 = vmatprep.subr.bf16.mxu0 %v913_v0  ;;  %v883_v1 = vld [vmem:[%s1157_s1] sm:$0xff]   ;;  %856 = vmatprep.mubr.msk.bf16.mxu0 %vm914_vm0, %v913_v0  ;;  %v884_v2 = vld [vmem:[%s1157_s1 + $0x8] sm:$0xff]  }
   0x2   :  { %853 = vmatpush3.bf16.msra.mxu0 %v883_v1  ;;  %v965_v3 = vld [vmem:[%s1158_s0] sm:$0xff]  ;;  %v970_v4 = vld [vmem:[%s1158_s0 + $0x8] sm:$0xff]  ;;  %s915_s0 = smov 32  }
   0x3   :  { %854 = vmatprep.subr.bf16.mxu0 %v913_v0  ;;  %v23_v5 = vpack.c.bf16 %v970_v4, %v965_v3  ;;  %v825_v6 = vld [vmem:[%s1159_s2] ss:$0 sm:$0xff]  ;;  %s923_s2 = smov 96  }
   0x6   :  { %855 = vmatpush3.bf16.msra.mxu0 %v884_v2 }
   0x9   :  { %857 = vmatmul.mubr.msk.bf16.vlgmr.msra.gmra.mrb[0].mxu0 %vm47_vm1, %v23_v5 }
  0xdc   :  { %v85_v7 = vpop.f32.mrb[0].mxu0 }
  0xdd   :  { %v86_v8 = vadd.f32 %v825_v6, %v85_v7  ;;  %v858_v9 = vpop.f32.mrb[1].mxu0 }
  0xde   :  { %v88_v10 = vpop.f32.mrb[2].mxu0 }
  0xdf   :  { %v94_v11 = vmul.f32 0.044715, %v86_v8  ;;  %v89_v12 = vadd.f32 %v825_v6, %v88_v10  ;;  %v859_v13 = vpop.f32.mrb[3].mxu0  ;;  %v92_v24 = vmul.f32 0.5, %v86_v8 }
  0xe1   :  { %v95_v14 = vmul.f32 0.044715, %v89_v12  ;;  %v96_v15 = vmul.f32 %v94_v11, %v86_v8  ;;  %v93_v28 = vmul.f32 0.5, %v89_v12 }
  0xe3   :  { %v98_v16 = vmul.f32 %v96_v15, %v86_v8  ;;  %v97_v17 = vmul.f32 %v95_v14, %v89_v12 }
  0xe5   :  { %v100_v18 = vadd.f32 %v98_v16, %v86_v8  ;;  %v99_v19 = vmul.f32 %v97_v17, %v89_v12 }
  0xe7   :  { %v102_v20 = vmul.f32 0.7978846, %v100_v18  ;;  %v101_v21 = vadd.f32 %v99_v19, %v89_v12 }
  0xe9   :  { %885 = vtanh.f32 %v102_v20  ;;  %v103_v22 = vmul.f32 0.7978846, %v101_v21 }
  0xeb   :  { %887 = vtanh.f32 %v103_v22 }
  0xf3   :  { %v886_v23 = vpop.eup %885 }
  0xf4   :  { %v106_v25 = vadd.f32 1.0, %v886_v23 }
  0xf5   :  { %v888_v26 = vpop.eup %887 }
  0xf6   :  { %v108_v27 = vmul.f32 %v106_v25, %v92_v24  ;;  %v107_v29 = vadd.f32 1.0, %v888_v26 }
  0xf8   :  { %v111_v30 = vsel %vm110_vm2, %v108_v27, 0.0  ;;  %v109_v31 = vmul.f32 %v107_v29, %v93_v28 }
  0xf9   :  { %112 = vadd.xlane.f32.xlu0 %v111_v30 }
  0xfa   :  { %v114_v32 = vsel %vm110_vm2, %v109_v31, 0.0 }
  0xfd   :  { %115 = vadd.xlane.f32.xlu0 %v114_v32 }
 0x186   :  { %v113_v33 = vpop.xlane.xlu0 %112 }
 0x187   :  { %v118_v34 = vmul.f32 0.015625, %v113_v33 }
 0x189   :  { %v120_v35 = vsub.f32 %v108_v27, %v118_v34 }
 0x18a   :  { %v116_v36 = vpop.xlane.xlu0 %115 }
 0x18b   :  { %v119_v37 = vmul.f32 0.015625, %v116_v36  ;;  %v122_v38 = vmul.f32 %v120_v35, %v120_v35 }
 0x18d   :  { %v121_v39 = vsub.f32 %v109_v31, %v119_v37  ;;  %v124_v40 = vsel %vm110_vm2, %v122_v38, 0.0 }
 0x18e   :  { %125 = vadd.xlane.f32.xlu1 %v124_v40 }
 0x18f   :  { %v123_v41 = vmul.f32 %v121_v39, %v121_v39 }
 0x191   :  { %v127_v42 = vsel %vm110_vm2, %v123_v41, 0.0 }
 0x192   :  { %128 = vadd.xlane.f32.xlu1 %v127_v42 }
 0x21b   :  { %v126_v43 = vpop.xlane.xlu1 %125 }
 0x21c   :  { %v130_v44 = vmul.f32 0.015625, %v126_v43 }
 0x21e   :  { %v132_v45 = vadd.f32 1e-05, %v130_v44 }
 0x21f   :  { %v129_v46 = vpop.xlane.xlu1 %128 }
 0x220   :  { %889 = vrsqrt.f32 %v132_v45  ;;  %v131_v47 = vmul.f32 0.015625, %v129_v46 }
 0x222   :  { %v133_v48 = vadd.f32 1e-05, %v131_v47 }
 0x224   :  { %891 = vrsqrt.f32 %v133_v48 }
 0x22a   :  { %v890_v49 = vpop.eup %889 }
 0x22b   :  { %v983_v50 = vmul.f32 %v890_v49, %v120_v35 }
 0x22d   :  { %v986_v51 = vadd.f32 1e-08, %v983_v50 }
 0x22e   :  { %v892_v52 = vpop.eup %891 }
 0x22f   :  { %v988_v53 = vmul.f32 %v892_v52, %v121_v39  ;;  %142 = vrot.lane.b32.xlu0 %v986_v51, %s915_s0  ;;  %v1000_v56 = vand.u32 2147483647, %v986_v51  ;;  %vm180_vm5 = vcmp.eq.f32.partialorder %v986_v51, 0.0  ;;  %vm183_vm7 = vcmp.ne.f32.partialorder %v986_v51, %v986_v51 }
 0x230   :  { %v193_v48 = vand.u32 2147483648, %v986_v51 }
 0x231   :  { %v993_v54 = vadd.f32 1e-08, %v988_v53  ;;  %vm189_vm11 = vcmp.eq.s32.totalorder %v1000_v56, inf }
 0x233   :  { %144 = vrot.lane.b32.xlu1 %v993_v54, %s915_s0  ;;  %v1013_v61 = vand.u32 2147483647, %v993_v54  ;;  %vm227_vm2 = vcmp.eq.f32.partialorder %v993_v54, 0.0 }
 0x2a1   :  { %v997_v55 = vpop.permute.xlu0 %142 }
 0x2a2   :  { %v1003_v57 = vand.u32 2147483647, %v997_v55  ;;  %vm178_vm4 = vcmp.lt.s32.totalorder %v997_v55, 0  ;;  %vm182_vm6 = vcmp.ne.f32.partialorder %v997_v55, %v997_v55  ;;  %vm175_vm8 = vcmp.lt.f32.partialorder %v997_v55, 0.0 }
 0x2a3   :  { %v179_v52 = vsel %vm178_vm4, 3.1415927, %v913_v0  ;;  %vm184_vm12 = vmor %vm182_vm6, %vm183_vm7  ;;  %v916_v55 = vmov 0.7853982   ;;  %vm230_vm4 = vcmp.ne.f32.partialorder %v993_v54, %v993_v54  ;;  %vm236_vm6 = vcmp.eq.s32.totalorder %v1013_v61, inf }
 0x2a4   :  { %v151_v58 = vmax.f32 %v1003_v57, %v1000_v56  ;;  %v150_v63 = vmin.f32 %v1003_v57, %v1000_v56  ;;  %vm172_vm3 = vcmp.gt.f32.partialorder %v1000_v56, %v1003_v57  ;;  %vm188_vm9 = vcmp.eq.s32.totalorder %v1003_v57, inf }
 0x2a5   :  { %v1007_v59 = vpop.permute.xlu1 %144  ;;  %vm190_vm14 = vmand %vm188_vm9, %vm189_vm11 }
 0x2a6   :  { %893 = vrcp.f32 %v151_v58  ;;  %v1010_v60 = vand.u32 2147483647, %v1007_v59  ;;  %vm225_vm13 = vcmp.lt.s32.totalorder %v1007_v59, 0  ;;  %vm229_vm15 = vcmp.ne.f32.partialorder %v1007_v59, %v1007_v59 }
 0x2a7   :  { %vm222_vm0 = vcmp.lt.f32.partialorder %v1007_v59, 0.0 }
 0x2a8   :  { %v198_v62 = vmax.f32 %v1010_v60, %v1013_v61  ;;  %v197_v6 = vmin.f32 %v1010_v60, %v1013_v61  ;;  %vm219_vm10 = vcmp.gt.f32.partialorder %v1013_v61, %v1010_v60 }
 0x2aa   :  { %895 = vrcp.f32 %v198_v62 }
 0x2b0   :  { %v894_v1 = vpop.eup %893 }
 0x2b1   :  { %v153_v2 = vmul.f32 %v894_v1, %v150_v63  ;;  %v187_v1 = vsel %vm175_vm8, 2.3561945, %v916_v55 }
 0x2b3   :  { %v154_v5 = vmul.f32 %v153_v2, %v153_v2 }
 0x2b4   :  { %v896_v7 = vpop.eup %895 }
 0x2b5   :  { %v155_v8 = vmul.f32 0.002785687, %v154_v5  ;;  %v200_v9 = vmul.f32 %v896_v7, %v197_v6 }
 0x2b7   :  { %v156_v10 = vadd.f32 -0.015866, %v155_v8  ;;  %v201_v11 = vmul.f32 %v200_v9, %v200_v9 }
 0x2b9   :  { %v157_v12 = vmul.f32 %v156_v10, %v154_v5  ;;  %v202_v13 = vmul.f32 0.002785687, %v201_v11 }
 0x2bb   :  { %v158_v14 = vadd.f32 0.04247222, %v157_v12  ;;  %v203_v15 = vadd.f32 -0.015866, %v202_v13 }
 0x2bd   :  { %v159_v16 = vmul.f32 %v158_v14, %v154_v5  ;;  %v204_v17 = vmul.f32 %v203_v15, %v201_v11 }
 0x2bf   :  { %v160_v18 = vadd.f32 -0.074975304, %v159_v16  ;;  %v205_v19 = vadd.f32 0.04247222, %v204_v17 }
 0x2c1   :  { %v161_v20 = vmul.f32 %v160_v18, %v154_v5  ;;  %v206_v21 = vmul.f32 %v205_v19, %v201_v11 }
 0x2c3   :  { %v162_v22 = vadd.f32 0.1064488, %v161_v20  ;;  %v207_v23 = vadd.f32 -0.074975304, %v206_v21 }
 0x2c5   :  { %v163_v24 = vmul.f32 %v162_v22, %v154_v5  ;;  %v208_v25 = vmul.f32 %v207_v23, %v201_v11 }
 0x2c7   :  { %v164_v26 = vadd.f32 -0.14207031, %v163_v24  ;;  %v209_v27 = vadd.f32 0.1064488, %v208_v25 }
 0x2c9   :  { %v165_v28 = vmul.f32 %v164_v26, %v154_v5  ;;  %v210_v29 = vmul.f32 %v209_v27, %v201_v11 }
 0x2cb   :  { %v166_v30 = vadd.f32 0.19993454, %v165_v28  ;;  %v211_v31 = vadd.f32 -0.14207031, %v210_v29 }
 0x2cd   :  { %v167_v32 = vmul.f32 %v166_v30, %v154_v5  ;;  %v212_v33 = vmul.f32 %v211_v31, %v201_v11 }
 0x2cf   :  { %v168_v34 = vadd.f32 -0.33333147, %v167_v32  ;;  %v213_v35 = vadd.f32 0.19993454, %v212_v33 }
 0x2d1   :  { %v169_v36 = vmul.f32 %v168_v34, %v154_v5  ;;  %v214_v37 = vmul.f32 %v213_v35, %v201_v11  ;;  %v226_v5 = vsel %vm225_vm13, 3.1415927, %v913_v0 }
 0x2d3   :  { %v170_v38 = vmul.f32 %v169_v36, %v153_v2  ;;  %v215_v39 = vadd.f32 -0.33333147, %v214_v37 }
 0x2d5   :  { %v171_v40 = vadd.f32 %v170_v38, %v153_v2  ;;  %v216_v41 = vmul.f32 %v215_v39, %v201_v11 }
 0x2d7   :  { %v173_v42 = vsub.f32 1.5707964, %v171_v40  ;;  %v217_v43 = vmul.f32 %v216_v41, %v200_v9 }
 0x2d9   :  { %v174_v44 = vsel %vm172_vm3, %v173_v42, %v171_v40  ;;  %v218_v45 = vadd.f32 %v217_v43, %v200_v9  ;;  %vm235_vm3 = vcmp.eq.s32.totalorder %v1010_v60, inf  ;;  %v234_v9 = vsel %vm222_vm0, 2.3561945, %v916_v55 }
 0x2da   :  { %v176_v46 = vsub.f32 3.1415927, %v174_v44  ;;  %vm237_vm7 = vmand %vm235_vm3, %vm236_vm6  ;;  %v240_v60 = vand.u32 2147483648, %v993_v54  ;;  %v917_v40 = vmov 683565275  }
 0x2db   :  { %v220_v47 = vsub.f32 1.5707964, %v218_v45 }
 0x2dc   :  { %v177_v49 = vsel %vm175_vm8, %v176_v46, %v174_v44  ;;  %v918_v44 = vmov 2475754826   ;;  %v919_v46 = vmov 2131351028  }
 0x2dd   :  { %v181_v58 = vsel %vm180_vm5, %v179_v52, %v177_v49  ;;  %v221_v62 = vsel %vm219_vm10, %v220_v47, %v218_v45  ;;  %vm231_vm5 = vmor %vm229_vm15, %vm230_vm4  ;;  %v921_v52 = vmov 920167782  }
 0x2de   :  { %v185_v63 = vsel %vm184_vm12, nan, %v181_v58  ;;  %v223_v57 = vsub.f32 3.1415927, %v221_v62 }
 0x2df   :  { %v191_v51 = vsel %vm190_vm14, %v187_v1, %v185_v63 }
 0x2e0   :  { %v192_v56 = vand.u32 2147483647, %v191_v51  ;;  %v224_v2 = vsel %vm222_vm0, %v223_v57, %v221_v62  ;;  %v922_v51 = vmov 1326507024  }
 0x2e1   :  { %v228_v6 = vsel %vm227_vm2, %v226_v5, %v224_v2 }
 0x2e2   :  { %v194_v7 = vor.u32 %v193_v48, %v192_v56  ;;  %v232_v8 = vsel %vm231_vm5, nan, %v228_v6  ;;  %v920_v48 = vmov 2102212464  }
 0x2e3   :  { %v238_v59 = vsel %vm237_vm7, %v234_v9, %v232_v8 }
 0x2e4   :  { %v242_v10 = vmul.f32 162.8155, %v194_v7  ;;  %v239_v11 = vand.u32 2147483647, %v238_v59 }
 0x2e6   :  { %v860_v12 = vtrunc.f32 %v242_v10  ;;  %v241_v13 = vor.u32 %v240_v60, %v239_v11 }
 0x2e8   :  { %v861_v14 = vcvt.f32.s32 %v860_v12  ;;  %v243_v15 = vmul.f32 162.8155, %v241_v13 }
 0x2ea   :  { %vm246_vm8 = vcmp.lt.s32.totalorder %v861_v14, 0  ;;  %v248_v16 = vadd.s32 1024, %v861_v14  ;;  %v862_v17 = vtrunc.f32 %v243_v15 }
 0x2ec   :  { %v863_v18 = vcvt.f32.s32 %v862_v17  ;;  %v250_v19 = vsel %vm246_vm8, %v248_v16, %v861_v14 }
 0x2ed   :  { %v252_v20 = vcvt.s32.f32 %v250_v19 }
 0x2ee   :  { %vm247_vm9 = vcmp.lt.s32.totalorder %v863_v18, 0  ;;  %v249_v61 = vadd.s32 1024, %v863_v18 }
 0x2ef   :  { %v1047_v21 = vmul.f32 0.006141921, %v252_v20 }
 0x2f0   :  { %v251_v22 = vsel %vm247_vm9, %v249_v61, %v863_v18 }
 0x2f1   :  { %v256_v23 = vand.u32 2147483647, %v1047_v21  ;;  %v259_v24 = vand.u32 2139095040, %v1047_v21  ;;  %v253_v54 = vcvt.s32.f32 %v251_v22  ;;  %vm258_vm9 = vcmp.lt.s32.totalorder %v1047_v21, 0 }
 0x2f3   :  { %v260_v25 = vshrl.u32 %v259_v24, 23  ;;  %v263_v26 = vand.u32 8388607, %v256_v23  ;;  %v1053_v27 = vmul.f32 0.006141921, %v253_v54 }
 0x2f5   :  { %v829_v28 = vadd.s32 4294967169, %v260_v25  ;;  %v363_v29 = vand.u32 2139095040, %v1053_v27  ;;  %v264_v31 = vor.u32 8388608, %v263_v26  ;;  %v360_v33 = vand.u32 2147483647, %v1053_v27 }
 0x2f7   :  { %v266_v30 = vadd.s32 1, %v829_v28  ;;  %v364_v32 = vshrl.u32 %v363_v29, 23  ;;  %v1057_v38 = vshll.u32 %v264_v31, 8  ;;  %v367_v42 = vand.u32 8388607, %v360_v33 }
 0x2f9   :  { %vm267_vm10 = vcmp.gt.s32.totalorder %v266_v30, 0  ;;  %v833_v35 = vadd.s32 4294967169, %v364_v32  ;;  %v368_v15 = vor.u32 8388608, %v367_v42 }
 0x2fa   :  { %v268_v34 = vsel %vm267_vm10, %v266_v30, 0  ;;  %vm257_vm10 = vcmp.le.f32.partialorder %v256_v23, 0.7853982 }
 0x2fb   :  { %v269_v36 = vshrl.u32 %v268_v34, 5  ;;  %v270_v37 = vand.u32 31, %v268_v34  ;;  %v370_v43 = vadd.s32 1, %v833_v35  ;;  %v408_v29 = vshll.u32 %v368_v15, 8 }
 0x2fd   :  { %v271_v39 = vsub.s32 32, %v270_v37  ;;  %v273_v41 = vshll.u32 %v917_v40, %v270_v37  ;;  %v276_v45 = vshll.u32 %v918_v44, %v270_v37  ;;  %v279_v47 = vshll.u32 %v919_v46, %v270_v37 }
 0x2fe   :  { %v282_v49 = vshll.u32 %v920_v48, %v270_v37  ;;  %v285_v58 = vshll.u32 %v921_v52, %v270_v37  ;;  %vm288_vm11 = vcmp.lt.s32.totalorder %v269_v36, 1  ;;  %vm290_vm12 = vcmp.lt.s32.totalorder %v269_v36, 3 }
 0x2ff   :  { %v274_v62 = vshrl.u32 %v918_v44, %v271_v39  ;;  %v277_v63 = vshrl.u32 %v919_v46, %v271_v39  ;;  %v280_v55 = vshrl.u32 %v920_v48, %v271_v39  ;;  %v272_v1 = vshrl.u32 %v917_v40, %v271_v39 }
 0x300   :  { %v283_v57 = vshrl.u32 %v921_v52, %v271_v39  ;;  %v286_v56 = vshrl.u32 %v922_v51, %v271_v39  ;;  %vm371_vm13 = vcmp.gt.s32.totalorder %v370_v43, 0  ;;  %vm291_vm14 = vcmp.lt.s32.totalorder %v269_v36, 4 }
 0x301   :  { %v275_v2 = vor.u32 %v274_v62, %v273_v41  ;;  %v278_v5 = vor.u32 %v277_v63, %v276_v45  ;;  %v281_v6 = vor.u32 %v280_v55, %v279_v47  ;;  %v372_v9 = vsel %vm371_vm13, %v370_v43, 0 }
 0x302   :  { %v284_v7 = vor.u32 %v283_v57, %v282_v49  ;;  %v287_v8 = vor.u32 %v286_v56, %v285_v58  ;;  %vm289_vm15 = vcmp.lt.s32.totalorder %v269_v36, 2  ;;  %v374_v18 = vand.u32 31, %v372_v9 }
 0x303   :  { %v292_v59 = vsel %vm288_vm11, %v272_v1, %v275_v2  ;;  %v293_v10 = vsel %vm291_vm14, %v281_v6, 2102212464  ;;  %v296_v11 = vsel %vm288_vm11, %v275_v2, %v278_v5  ;;  %v300_v60 = vsel %vm288_vm11, %v278_v5, %v281_v6 }
 0x304   :  { %v294_v12 = vsel %vm290_vm12, %v278_v5, %v293_v10  ;;  %v297_v13 = vsel %vm291_vm14, %v284_v7, 920167782  ;;  %v301_v14 = vsel %vm291_vm14, %v287_v8, 1326507024  ;;  %v373_v26 = vshrl.u32 %v372_v9, 5 }
 0x305   :  { %v298_v16 = vsel %vm290_vm12, %v281_v6, %v297_v13  ;;  %v302_v17 = vsel %vm290_vm12, %v284_v7, %v301_v14  ;;  %v295_v19 = vsel %vm289_vm15, %v292_v59, %v294_v12  ;;  %v375_v28 = vsub.s32 32, %v374_v18 }
 0x306   :  { %v299_v20 = vsel %vm289_vm15, %v296_v11, %v298_v16  ;;  %v303_v61 = vsel %vm289_vm15, %v300_v60, %v302_v17  ;;  %v311_v30 = vmul.u32 %v1057_v38, %v295_v19  ;;  %v377_v31 = vshll.u32 %v917_v40, %v374_v18 }
 0x307   :  { %v1070_v22 = vmul.u32.u64.low %v1057_v38, %v303_v61  ;;  %v1071_v24 = vmul.u32.u64.high %v1057_v38, %v303_v61, %v1070_v22  ;;  %v1074_v54 = vmul.u32.u64.low %v1057_v38, %v299_v20  ;;  %v1075_v25 = vmul.u32.u64.high %v1057_v38, %v299_v20, %v1074_v54 }
 0x308   :  { %v380_v32 = vshll.u32 %v918_v44, %v374_v18  ;;  %v383_v34 = vshll.u32 %v919_v46, %v374_v18  ;;  %v378_v35 = vshrl.u32 %v918_v44, %v375_v28  ;;  %v381_v36 = vshrl.u32 %v919_v46, %v375_v28 }
 0x309   :  { %v384_v37 = vshrl.u32 %v920_v48, %v375_v28  ;;  %v386_v39 = vshll.u32 %v920_v48, %v374_v18  ;;  %vm313_vm0 = vc.u32 %v1071_v24, %v1074_v54  ;;  %v314_v41 = vadd.s32 1, %v1075_v25 }
 0x30a   :  { %v387_v42 = vshrl.u32 %v921_v52, %v375_v28  ;;  %v389_v43 = vshll.u32 %v921_v52, %v374_v18  ;;  %v379_v45 = vor.u32 %v378_v35, %v377_v31  ;;  %v382_v47 = vor.u32 %v381_v36, %v380_v32 }
 0x30b   :  { %v385_v49 = vor.u32 %v384_v37, %v383_v34  ;;  %v390_v58 = vshrl.u32 %v922_v51, %v375_v28  ;;  %v315_v38 = vsel %vm313_vm0, %v314_v41, %v1075_v25  ;;  %vm392_vm2 = vcmp.lt.s32.totalorder %v373_v26, 1 }
 0x30c   :  { %v388_v62 = vor.u32 %v387_v42, %v386_v39  ;;  %vm395_vm3 = vcmp.lt.s32.totalorder %v373_v26, 4  ;;  %v316_v44 = vadd.s32 %v315_v38, %v311_v30  ;;  %vm394_vm4 = vcmp.lt.s32.totalorder %v373_v26, 3 }
 0x30d   :  { %v391_v46 = vor.u32 %v390_v58, %v389_v43  ;;  %v397_v48 = vsel %vm395_vm3, %v385_v49, 2102212464  ;;  %v376_v63 = vshrl.u32 %v917_v40, %v375_v28  ;;  %v400_v55 = vsel %vm392_vm2, %v379_v45, %v382_v47 }
 0x30e   :  { %v401_v1 = vsel %vm395_vm3, %v388_v62, 920167782  ;;  %v404_v57 = vsel %vm392_vm2, %v382_v47, %v385_v49  ;;  %v317_v56 = vadd.s32 536870912, %v316_v44  ;;  %vm393_vm5 = vcmp.lt.s32.totalorder %v373_v26, 2 }
 0x30f   :  { %v402_v52 = vsel %vm394_vm4, %v385_v49, %v401_v1  ;;  %v405_v2 = vsel %vm395_vm3, %v391_v46, 1326507024  ;;  %v396_v5 = vsel %vm392_vm2, %v376_v63, %v379_v45  ;;  %v398_v51 = vsel %vm394_vm4, %v382_v47, %v397_v48 }
 0x310   :  { %v403_v6 = vsel %vm393_vm5, %v400_v55, %v402_v52  ;;  %v406_v7 = vsel %vm394_vm4, %v388_v62, %v405_v2  ;;  %v318_v8 = vshrl.u32 %v317_v56, 30  ;;  %v399_v12 = vsel %vm393_vm5, %v396_v5, %v398_v51 }
 0x311   :  { %v407_v9 = vsel %vm393_vm5, %v404_v57, %v406_v7  ;;  %v1085_v59 = vmul.u32.u64.low %v408_v29, %v403_v6  ;;  %v1086_v10 = vmul.u32.u64.high %v408_v29, %v403_v6, %v1085_v59  ;;  %v415_v15 = vmul.u32 %v408_v29, %v399_v12 }
 0x312   :  { %v1088_v11 = vmul.u32.u64.low %v408_v29, %v407_v9  ;;  %v1089_v60 = vmul.u32.u64.high %v408_v29, %v407_v9, %v1088_v11  ;;  %v319_v40 = vshll.u32 %v318_v8, 30  ;;  %v312_v31 = vadd.s32 %v1074_v54, %v1071_v24 }
 0x313   :  { %v418_v14 = vadd.s32 1, %v1086_v10  ;;  %v342_v62 = vsub.s32 4, %v318_v8  ;;  %vm362_vm11 = vcmp.lt.s32.totalorder %v1053_v27, 0  ;;  %vm361_vm12 = vcmp.le.f32.partialorder %v360_v33, 0.7853982 }
 0x314   :  { %v320_v13 = vsub.s32 %v316_v44, %v319_v40  ;;  %vm417_vm6 = vc.u32 %v1089_v60, %v1085_v59  ;;  %v416_v24 = vadd.s32 %v1085_v59, %v1089_v60  ;;  %vm348_vm4 = vweird.f32 %v1047_v21 }
 0x315   :  { %v419_v17 = vsel %vm417_vm6, %v418_v14, %v1086_v10  ;;  %v343_v56 = vsel %vm258_vm9, %v342_v62, %v318_v8 }
 0x316   :  { %v322_v16 = vsub.s32 0, %v320_v13  ;;  %v420_v18 = vadd.s32 %v419_v17, %v415_v15  ;;  %v345_v51 = vsel %vm257_vm10, 0, %v343_v56 }
 0x317   :  { %v349_v59 = vadd.s32 3, %v345_v51  ;;  %v557_v60 = vand.u32 3, %v345_v51 }
 0x318   :  { %v830_v19 = vmin.u32 %v322_v16, %v320_v13  ;;  %v421_v20 = vadd.s32 536870912, %v420_v18 }
 0x319   :  { %v350_v12 = vand.u32 3, %v349_v59  ;;  %vm562_vm13 = vcmp.eq.s32.totalorder %v557_v60, 2  ;;  %vm559_vm0 = vcmp.eq.s32.totalorder %v557_v60, 0  ;;  %vm558_vm3 = vcmp.lt.s32.totalorder %v557_v60, 2 }
 0x31a   :  { %v324_v61 = vclz %v830_v19  ;;  %v422_v22 = vshrl.u32 %v421_v20, 30 }
 0x31b   :  { %vm355_vm14 = vcmp.eq.s32.totalorder %v350_v12, 2  ;;  %vm352_vm15 = vcmp.eq.s32.totalorder %v350_v12, 0  ;;  %vm351_vm2 = vcmp.lt.s32.totalorder %v350_v12, 2 }
 0x31c   :  { %v831_v25 = vadd.s32 4294967294, %v324_v61  ;;  %v423_v26 = vshll.u32 %v422_v22, 30  ;;  %v446_v11 = vsub.s32 4, %v422_v22 }
 0x31e   :  { %vm832_vm7 = vcmp.lt.s32.totalorder %v831_v25, 0  ;;  %v424_v30 = vsub.s32 %v420_v18, %v423_v26  ;;  %v447_v8 = vsel %vm362_vm11, %v446_v11, %v422_v22 }
 0x31f   :  { %v327_v28 = vsel %vm832_vm7, 0, %v831_v25  ;;  %v449_v18 = vsel %vm361_vm12, 0, %v447_v8  ;;  %v848_v8 = vld [vmem:[%s1160_s4] ss:$0 sm:$0xff] }
 0x320   :  { %v328_v32 = vsub.s32 32, %v327_v28  ;;  %v332_v29 = vsub.s32 4294967266, %v327_v28  ;;  %v426_v34 = vsub.s32 0, %v424_v30  ;;  %v329_v35 = vshll.u32 %v320_v13, %v327_v28 }
 0x321   :  { %v453_v26 = vadd.s32 3, %v449_v18 }
 0x322   :  { %v330_v36 = vshrl.u32 %v312_v31, %v328_v32  ;;  %v333_v37 = vadd.s32 127, %v332_v29  ;;  %v834_v39 = vmin.u32 %v426_v34, %v424_v30  ;;  %v660_v29 = vand.u32 3, %v449_v18 }
 0x323   :  { %v454_v32 = vand.u32 3, %v453_v26 }
 0x324   :  { %v331_v41 = vor.u32 %v330_v36, %v329_v35  ;;  %v334_v42 = vshll.u32 %v333_v37, 23  ;;  %v428_v43 = vclz %v834_v39  ;;  %vm665_vm6 = vcmp.eq.s32.totalorder %v660_v29, 2 }
 0x325   :  { %vm459_vm5 = vcmp.eq.s32.totalorder %v454_v32, 2  ;;  %vm456_vm7 = vcmp.eq.s32.totalorder %v454_v32, 0 }
 0x326   :  { %v335_v45 = vor.u32 4788187, %v334_v42  ;;  %v835_v47 = vadd.s32 4294967294, %v428_v43  ;;  %v338_v58 = vcvt.s32.f32 %v331_v41 }
 0x328   :  { %v336_v49 = vand.u32 2147483647, %v335_v45  ;;  %vm836_vm8 = vcmp.lt.s32.totalorder %v835_v47, 0 }
 0x329   :  { %v431_v44 = vsel %vm836_vm8, 0, %v835_v47  ;;  %vm662_vm8 = vcmp.eq.s32.totalorder %v660_v29, 0 }
 0x32a   :  { %v339_v38 = vmul.f32 %v338_v58, %v336_v49  ;;  %v432_v54 = vsub.s32 32, %v431_v44  ;;  %v436_v46 = vsub.s32 4294967266, %v431_v44  ;;  %v433_v63 = vshll.u32 %v424_v30, %v431_v44 }
 0x32c   :  { %v340_v48 = vxor.u32 2147483648, %v339_v38  ;;  %v434_v55 = vshrl.u32 %v416_v24, %v432_v54  ;;  %v437_v1 = vadd.s32 127, %v436_v46 }
 0x32e   :  { %v341_v57 = vsel %vm258_vm9, %v340_v48, %v339_v38  ;;  %v435_v2 = vor.u32 %v434_v55, %v433_v63  ;;  %v438_v5 = vshll.u32 %v437_v1, 23  ;;  %vm455_vm9 = vcmp.lt.s32.totalorder %v454_v32, 2 }
 0x32f   :  { %v344_v52 = vsel %vm257_vm10, %v1047_v21, %v341_v57  ;;  %vm661_vm10 = vcmp.lt.s32.totalorder %v660_v29, 2 }
 0x330   :  { %897 = vcosq.f32 %v344_v52  ;;  %v439_v6 = vor.u32 4788187, %v438_v5  ;;  %v442_v9 = vcvt.s32.f32 %v435_v2 }
 0x331   :  { %899 = vsinq.f32 %v344_v52 }
 0x332   :  { %v440_v7 = vand.u32 2147483647, %v439_v6 }
 0x334   :  { %v443_v10 = vmul.f32 %v442_v9, %v440_v7 }
 0x336   :  { %v444_v40 = vxor.u32 2147483648, %v443_v10 }
 0x338   :  { %v445_v23 = vsel %vm362_vm11, %v444_v40, %v443_v10  ;;  %vm452_vm11 = vweird.f32 %v1053_v27 }
 0x339   :  { %v448_v14 = vsel %vm361_vm12, %v1053_v27, %v445_v23 }
 0x33a   :  { %v898_v13 = vpop.eup %897  ;;  %901 = vcosq.f32 %v448_v14 }
 0x33b   :  { %v900_v15 = vpop.eup %899  ;;  %v356_v16 = vxor.u32 2147483648, %v898_v13  ;;  %903 = vsinq.f32 %v448_v14 }
 0x33c   :  { %v353_v17 = vxor.u32 2147483648, %v900_v15 }
 0x33d   :  { %v564_v19 = vsel %vm562_vm13, %v356_v16, %v900_v15  ;;  %v357_v20 = vsel %vm355_vm14, %v356_v16, %v900_v15  ;;  %vm794_vm14 = vcmp.eq.f32.partialorder %v965_v3, 0.0 }
 0x33e   :  { %v561_v33 = vsel %vm559_vm0, %v898_v13, %v353_v17  ;;  %v354_v61 = vsel %vm352_vm15, %v898_v13, %v353_v17  ;;  %vm795_vm15 = vcmp.eq.f32.partialorder %v970_v4, 0.0  ;;  %vm818_vm0 = vcmask 523520  }
 0x33f   :  { %v565_v22 = vsel %vm558_vm3, %v561_v33, %v564_v19  ;;  %v358_v25 = vsel %vm351_vm2, %v354_v61, %v357_v20 }
 0x340   :  { %v566_v28 = vsel %vm348_vm4, nan, %v565_v22  ;;  %v359_v30 = vsel %vm348_vm4, nan, %v358_v25 }
 0x341   :  { %672 = vrot.lane.b32.xlu1 %v566_v28, %s923_s2  ;;  %v680_v31 = vmul.f32 %v359_v30, %v983_v50  ;;  %v847_v28 = vld [vmem:[%s1161_s3] ss:$0 sm:$0xff] }
 0x343   :  { %v684_v34 = vmul.f32 %v680_v31, %v680_v31 }
 0x344   :  { %v902_v35 = vpop.eup %901 }
 0x345   :  { %688 = vrot.lane.b32.xlu0 %v684_v34, %s923_s2  ;;  %v904_v36 = vpop.eup %903  ;;  %v460_v37 = vxor.u32 2147483648, %v902_v35 }
 0x346   :  { %v457_v39 = vxor.u32 2147483648, %v904_v36 }
 0x347   :  { %v461_v21 = vsel %vm459_vm5, %v460_v37, %v904_v36  ;;  %v667_v41 = vsel %vm665_vm6, %v460_v37, %v904_v36 }
 0x348   :  { %v458_v42 = vsel %vm456_vm7, %v902_v35, %v457_v39  ;;  %v664_v43 = vsel %vm662_vm8, %v902_v35, %v457_v39 }
 0x349   :  { %v462_v45 = vsel %vm455_vm9, %v458_v42, %v461_v21  ;;  %v668_v47 = vsel %vm661_vm10, %v664_v43, %v667_v41 }
 0x34a   :  { %v463_v49 = vsel %vm452_vm11, nan, %v462_v45  ;;  %v669_v58 = vsel %vm452_vm11, nan, %v668_v47 }
 0x34b   :  { %v681_v38 = vmul.f32 %v463_v49, %v988_v53  ;;  %674 = vrot.lane.b32.xlu1 %v669_v58, %s923_s2 }
 0x34d   :  { %v685_v62 = vmul.f32 %v681_v38, %v681_v38 }
 0x34f   :  { %690 = vrot.lane.b32.xlu1 %v685_v62, %s923_s2 }
 0x3b3   :  { %v673_v44 = vpop.permute.xlu1 %672 }
 0x3b4   :  { %v678_v24 = vmul.f32 %v673_v44, %v983_v50 }
 0x3b6   :  { %v682_v54 = vmul.f32 %v678_v24, %v678_v24 }
 0x3b7   :  { %v689_v46 = vpop.permute.xlu0 %688 }
 0x3b8   :  { %v694_v48 = vadd.f32 %v689_v46, %v682_v54 }
 0x3ba   :  { %v696_v63 = vadd.f32 1e-08, %v694_v48 }
 0x3bc   :  { %905 = vrsqrt.f32 %v696_v63 }
 0x3bd   :  { %v675_v27 = vpop.permute.xlu1 %674 }
 0x3be   :  { %v679_v55 = vmul.f32 %v675_v27, %v988_v53 }
 0x3c0   :  { %v683_v1 = vmul.f32 %v679_v55, %v679_v55 }
 0x3c1   :  { %v691_v57 = vpop.permute.xlu1 %690 }
 0x3c2   :  { %v695_v56 = vadd.f32 %v691_v57, %v683_v1 }
 0x3c4   :  { %v697_v52 = vadd.f32 1e-08, %v695_v56 }
 0x3c6   :  { %v906_v2 = vpop.eup %905  ;;  %907 = vrsqrt.f32 %v697_v52 }
 0x3c7   :  { %v700_v5 = vmul.f32 0.17677669, %v906_v2 }
 0x3c9   :  { %706 = vrot.lane.b32.xlu0 %v700_v5, %s915_s0  ;;  %v702_v51 = vmul.f32 %v700_v5, %v678_v24 }
 0x3cb   :  { %v714_v40 = vmul.f32 %v702_v51, %v702_v51 }
 0x3d0   :  { %v908_v6 = vpop.eup %907 }
 0x3d1   :  { %v701_v50 = vmul.f32 0.17677669, %v908_v6 }
 0x3d3   :  { %708 = vrot.lane.b32.xlu1 %v701_v50, %s915_s0  ;;  %v703_v7 = vmul.f32 %v701_v50, %v679_v55 }
 0x3d5   :  { %v715_v15 = vmul.f32 %v703_v7, %v703_v7 }
 0x43b   :  { %v707_v9 = vpop.permute.xlu0 %706 }
 0x43c   :  { %v712_v59 = vmul.f32 %v707_v9, %v680_v31 }
 0x43e   :  { %v716_v10 = vmul.f32 %v712_v59, %v712_v59 }
 0x440   :  { %720 = vrot.lane.b32.xlu0 %v716_v10, %s923_s2 }
 0x445   :  { %v709_v53 = vpop.permute.xlu1 %708 }
 0x446   :  { %v713_v11 = vmul.f32 %v709_v53, %v681_v38 }
 0x448   :  { %v717_v60 = vmul.f32 %v713_v11, %v713_v11 }
 0x44a   :  { %722 = vrot.lane.b32.xlu1 %v717_v60, %s923_s2 }
 0x4b2   :  { %v721_v12 = vpop.permute.xlu0 %720 }
 0x4b3   :  { %v726_v23 = vadd.f32 %v721_v12, %v714_v40 }
 0x4b5   :  { %vm728_vm12 = vcmp.lt.f32.partialorder %v726_v23, 0.00999999 }
 0x4b6   :  { %v845_v13 = vsel %vm728_vm12, 1.0, %v913_v0 }
 0x4b7   :  { %v752_v14 = vmul.f32 %v848_v8, %v845_v13  ;;  %v741_v30 = vmul.f32 %v847_v28, %v845_v13 }
 0x4b9   :  { %756 = vrot.lane.b32.xlu0 %v752_v14, %s915_s0  ;;  %v743_v31 = vadd.f32 %v741_v30, %v702_v51 }
 0x4bc   :  { %v723_v16 = vpop.permute.xlu1 %722 }
 0x4bd   :  { %v727_v17 = vadd.f32 %v723_v16, %v715_v15 }
 0x4bf   :  { %vm729_vm13 = vcmp.lt.f32.partialorder %v727_v17, 0.00999999 }
 0x4c0   :  { %v846_v18 = vsel %vm729_vm13, 1.0, %v913_v0  ;;  %v764_v0 = vmul.f32 %v743_v31, %v743_v31 }
 0x4c1   :  { %v753_v19 = vmul.f32 %v848_v8, %v846_v18  ;;  %v742_v34 = vmul.f32 %v847_v28, %v846_v18 }
 0x4c3   :  { %758 = vrot.lane.b32.xlu1 %v753_v19, %s915_s0  ;;  %v744_v36 = vadd.f32 %v742_v34, %v703_v7 }
 0x4c5   :  { %v765_v37 = vmul.f32 %v744_v36, %v744_v36 }
 0x52b   :  { %v757_v20 = vpop.permute.xlu0 %756 }
 0x52c   :  { %v762_v33 = vadd.f32 %v757_v20, %v712_v59 }
 0x52e   :  { %v766_v61 = vmul.f32 %v762_v33, %v762_v33 }
 0x530   :  { %770 = vrot.lane.b32.xlu0 %v766_v61, %s923_s2 }
 0x535   :  { %v759_v22 = vpop.permute.xlu1 %758 }
 0x536   :  { %v763_v25 = vadd.f32 %v759_v22, %v713_v11 }
 0x538   :  { %v767_v26 = vmul.f32 %v763_v25, %v763_v25 }
 0x53a   :  { %772 = vrot.lane.b32.xlu1 %v767_v26, %s923_s2 }
 0x5a2   :  { %v771_v32 = vpop.permute.xlu0 %770 }
 0x5a3   :  { %v776_v29 = vadd.f32 %v771_v32, %v764_v0 }
 0x5a5   :  { %v778_v35 = vadd.f32 1e-08, %v776_v29 }
 0x5a7   :  { %909 = vrsqrt.f32 %v778_v35 }
 0x5ac   :  { %v773_v39 = vpop.permute.xlu1 %772 }
 0x5ad   :  { %v777_v21 = vadd.f32 %v773_v39, %v765_v37 }
 0x5af   :  { %v779_v41 = vadd.f32 1e-08, %v777_v21 }
 0x5b1   :  { %v910_v42 = vpop.eup %909  ;;  %911 = vrsqrt.f32 %v779_v41 }
 0x5b2   :  { %786 = vrot.lane.b32.xlu0 %v910_v42, %s915_s0  ;;  %v782_v43 = vmul.f32 %v910_v42, %v743_v31 }
 0x5b4   :  { %v796_v45 = vsel %vm794_vm14, 0.0, %v782_v43 }
 0x5b5   :  { %808 = vst.msk [vmem:[%s1162_s5] sm:$0xff] %vm47_vm1, %v796_v45 }
 0x5bb   :  { %v912_v47 = vpop.eup %911 }
 0x5bc   :  { %788 = vrot.lane.b32.xlu1 %v912_v47, %s915_s0  ;;  %v783_v49 = vmul.f32 %v912_v47, %v744_v36 }
 0x5be   :  { %v797_v58 = vsel %vm795_vm15, 0.0, %v783_v49 }
 0x5bf   :  { %809 = vst.msk [vmem:[%s1162_s5 + $0x8] sm:$0xff] %vm47_vm1, %v797_v58 }
 0x624   :  { %v787_v38 = vpop.permute.xlu0 %786 }
 0x625   :  { %v792_v62 = vmul.f32 %v787_v38, %v762_v33 }
 0x627   :  { %800 = vrot.lane.b32.xlu0 %v792_v62, %s923_s2 }
 0x62e   :  { %v789_v44 = vpop.permute.xlu1 %788 }
 0x62f   :  { %v793_v24 = vmul.f32 %v789_v44, %v763_v25 }
 0x631   :  { %802 = vrot.lane.b32.xlu1 %v793_v24, %s923_s2 }
 0x699   :  { %v801_v54 = vpop.permute.xlu0 %800 }
 0x69a   :  { %v806_v4 = vsel %vm794_vm14, 0.0, %v801_v54 }
 0x69b   :  { %812 = vrot.lane.b32.xlu0 %v806_v4, %s915_s0 }
 0x6a3   :  { %v803_v46 = vpop.permute.xlu1 %802 }
 0x6a4   :  { %v807_v48 = vsel %vm795_vm15, 0.0, %v803_v46 }
 0x6a5   :  { %814 = vrot.lane.b32.xlu1 %v807_v48, %s915_s0 }
 0x70d   :  { %v813_v63 = vpop.permute.xlu0 %812 }
 0x70e   :  { %819 = vst.msk [vmem:[%s1162_s5] sm:$0xff] %vm818_vm0, %v813_v63 }
 0x717   :  { %v815_v27 = vpop.permute.xlu1 %814 }
 0x718   :  { %820 = vst.msk [vmem:[%s1162_s5 + $0x8] sm:$0xff] %vm818_vm0, %v815_v27 }

</bundles_post_ra>
